<compile_context>
chip_gen: v6e
topology: v6e:2x2x1
jax: 0.10.0
libtpu: 0.0.40
codegen_flags: <defaults>
</compile_context>

<pallas_src>
import functools

import jax
import jax.numpy as jnp
from jax import lax
from jax.experimental import pallas as pl
from jax.experimental.pallas import tpu as pltpu


def _mhsa_kernel(x_ref, wqkv_ref, bqkv_ref, rel_ref, o_ref, *,
                 heads, head_dim, n_valid, compute_dtype, approx_recip):
    tb = x_ref.shape[0]
    n_pad = x_ref.shape[2]
    c = heads * head_dim

    w = wqkv_ref[...].astype(compute_dtype)        # (3C, C)
    bias = bqkv_ref[...]                           # (3C, 1) f32
    rel_all = rel_ref[...]                         # (heads, Dh, Np) f32

    # Key-padding mask (hoisted: built once, reused for every batch/head).
    pad_mask = None
    if n_valid < n_pad:
        col = lax.broadcasted_iota(jnp.int32, (1, n_pad), 1)
        pad_mask = col >= n_valid

    for b in range(tb):
        x = x_ref[b].astype(compute_dtype)         # (C, Np) channels on sublanes
        # Fused Q/K/V projection for all heads: (3C, C) @ (C, Np) -> (3C, Np),
        # f32 accumulation on the MXU, single bias add.
        qkv = jnp.dot(w, x, preferred_element_type=jnp.float32) + bias

        head_outs = []
        for h in range(heads):
            q = qkv[h * head_dim:(h + 1) * head_dim]                    # (Dh, Np)
            k = qkv[c + h * head_dim:c + (h + 1) * head_dim]            # (Dh, Np)
            v = qkv[2 * c + h * head_dim:2 * c + (h + 1) * head_dim]    # (Dh, Np)
            rel = rel_all[h]                                            # (Dh, Np)

            # energy = q^T k + rel^T q, fused into ONE matmul of depth 2*Dh:
            #   energy[i, j] = sum_d [q; rel][d, i] * [k; q][d, j]
            qr = jnp.concatenate([q, rel], axis=0)                      # (2Dh, Np) f32
            kq = jnp.concatenate([k, q], axis=0)                        # (2Dh, Np) f32
            energy = jnp.dot(qr.T.astype(compute_dtype),                # (Np, 2Dh)
                             kq.astype(compute_dtype),                  # (2Dh, Np)
                             preferred_element_type=jnp.float32)        # (Np, Np)
            if pad_mask is not None:
                energy = jnp.where(pad_mask, jnp.float32(-1e30), energy)

            # Exact softmax over keys (f32 epilogue; reciprocal on the EUP).
            m = jnp.max(energy, axis=-1, keepdims=True)
            p = jnp.exp(energy - m)
            l = jnp.sum(p, axis=-1, keepdims=True)
            att = p * pl.reciprocal(l, approx=approx_recip)             # (Np, Np)

            # out[d, i] = sum_j v[d, j] * att[i, j]   (rhs-transposed matmul)
            out_h = lax.dot_general(v.astype(compute_dtype),
                                    att.astype(compute_dtype),
                                    (((1,), (1,)), ((), ())),
                                    preferred_element_type=jnp.float32)  # (Dh, Np)
            head_outs.append(out_h)

        # Single lane-dense (C, Np) store per batch element.
        o_ref[b] = jnp.concatenate(head_outs, axis=0).astype(o_ref.dtype)


def _auto_batch_block(batch):
    # Largest divisor of `batch` that is <= 8 while keeping >= 2 grid steps
    # (so v7x can shard the batch across its 2 TensorCores).
    best = 1
    for tb in range(1, min(8, batch) + 1):
        if batch % tb == 0 and (batch // tb >= 2 or batch == 1):
            best = tb
    return best


@functools.partial(jax.jit, static_argnames=("heads", "use_bf16", "batch_block"))
def mhsa_pallas(x, wq, bq, wk, bk, wv, bv, rel_h, rel_w, *, heads,
                use_bf16=True, batch_block=None):
    """x: (B, C, W, H) -> (B, C, W, H). Fused per-batch-tile, all-heads MHSA."""
    B, C, W, H = x.shape
    assert C % heads == 0, "channels must divide heads"
    Dh = C // heads
    N = W * H
    Np = ((N + 7) // 8) * 8                  # sublane-align the attention matrix

    if batch_block is None:
        batch_block = _auto_batch_block(B)
    assert B % batch_block == 0, "batch_block must divide batch"
    nb = B // batch_block

    # Channel-major tokens: (B, C, N) -- a free reshape, no HBM transpose.
    x_cn = x.reshape(B, C, N)
    if Np != N:
        x_cn = jnp.pad(x_cn, ((0, 0), (0, 0), (0, Np - N)))

    # Fused QKV conv-1x1 weights / biases: rows ordered [q(0..C), k, v].
    w_qkv = jnp.concatenate([wq.reshape(C, C), wk.reshape(C, C),
                             wv.reshape(C, C)], axis=0)            # (3C, C)
    b_qkv = jnp.concatenate([bq.reshape(C), bk.reshape(C),
                             bv.reshape(C)], axis=0).reshape(3 * C, 1)

    # rel_h (1,h,Dh,1,H) + rel_w (1,h,Dh,W,1) -> (heads, Dh, N), position-last.
    rel = (rel_h + rel_w).reshape(heads, Dh, N)
    if Np != N:
        rel = jnp.pad(rel, ((0, 0), (0, 0), (0, Np - N)))

    compute_dtype = jnp.bfloat16 if use_bf16 else jnp.float32
    kernel = functools.partial(
        _mhsa_kernel, heads=heads, head_dim=Dh, n_valid=N,
        compute_dtype=compute_dtype, approx_recip=use_bf16)

    # Advisory cost hint: fused QKV projection + fused energy + att@v.
    flops = int(2 * B * (3 * C) * C * Np
                + 2 * B * heads * (2 * Dh) * Np * Np
                + 2 * B * heads * Dh * Np * Np)
    cost = pl.CostEstimate(
        flops=flops,
        transcendentals=int(B * heads * Np * Np),
        bytes_accessed=int(4 * (2 * B * C * Np + 3 * C * C + 3 * C
                                + heads * Dh * Np)))

    out = pl.pallas_call(
        kernel,
        out_shape=jax.ShapeDtypeStruct((B, C, Np), x.dtype),
        grid_spec=pltpu.PrefetchScalarGridSpec(
            num_scalar_prefetch=0,
            grid=(nb,),
            in_specs=[
                pl.BlockSpec((batch_block, C, Np), lambda i: (i, 0, 0)),  # tokens
                pl.BlockSpec((3 * C, C), lambda i: (0, 0)),               # W_qkv
                pl.BlockSpec((3 * C, 1), lambda i: (0, 0)),               # b_qkv
                pl.BlockSpec((heads, Dh, Np), lambda i: (0, 0, 0)),       # rel pos
            ],
            out_specs=pl.BlockSpec((batch_block, C, Np), lambda i: (i, 0, 0)),
        ),
        compiler_params=pltpu.CompilerParams(
            dimension_semantics=("parallel",),
        ),
        cost_estimate=cost,
    )(x_cn, w_qkv, b_qkv, rel)

    if Np != N:
        out = out[:, :, :N]
    # (B, C, N) reshapes directly back to (B, C, W, H) -- no transpose.
    return out.reshape(B, C, W, H)


def mhsa_reference(x, wq, bq, wk, bk, wv, bv, rel_h, rel_w, heads):
    """Pure-JAX replica of the PyTorch MHSA.forward."""
    B, C, W, H = x.shape
    Dh = C // heads
    N = W * H
    x_cn = x.reshape(B, C, N)

    def proj(w, b):
        y = jnp.einsum("oc,bcn->bon", w.reshape(C, C), x_cn) + b.reshape(1, C, 1)
        return y.reshape(B, heads, Dh, N)

    q = proj(wq, bq)
    k = proj(wk, bk)
    v = proj(wv, bv)
    cc = jnp.einsum("bhdi,bhdj->bhij", q, k)                 # q^T k
    rel = (rel_h + rel_w).reshape(heads, Dh, N)
    cp = jnp.einsum("hdi,bhdj->bhij", rel, q)                # rel^T q
    att = jax.nn.softmax(cc + cp, axis=-1)
    out = jnp.einsum("bhdj,bhij->bhdi", v, att)              # v att^T
    return out.reshape(B, C, W, H)


def _run_case(B, C, W, H, heads, key, use_bf16, tol):
    Dh = C // heads
    keys = jax.random.split(key, 9)
    s = float(C) ** -0.5
    x = jax.random.normal(keys[0], (B, C, W, H), jnp.float32)
    wq = jax.random.uniform(keys[1], (C, C), jnp.float32, -s, s)
    bq = jax.random.uniform(keys[2], (C,), jnp.float32, -s, s)
    wk = jax.random.uniform(keys[3], (C, C), jnp.float32, -s, s)
    bk = jax.random.uniform(keys[4], (C,), jnp.float32, -s, s)
    wv = jax.random.uniform(keys[5], (C, C), jnp.float32, -s, s)
    bv = jax.random.uniform(keys[6], (C,), jnp.float32, -s, s)
    rel_h = jax.random.normal(keys[7], (1, heads, Dh, 1, H), jnp.float32)
    rel_w = jax.random.normal(keys[8], (1, heads, Dh, W, 1), jnp.float32)

    out = mhsa_pallas(x, wq, bq, wk, bk, wv, bv, rel_h, rel_w,
                      heads=heads, use_bf16=use_bf16)
    out = jax.block_until_ready(out)

    ref = mhsa_reference(x, wq, bq, wk, bk, wv, bv, rel_h, rel_w, heads)
    assert out.shape == (B, C, W, H)
    assert bool(jnp.allclose(out, ref, atol=tol, rtol=tol)), (
        f"mismatch vs reference (B={B},C={C},W={W},H={H},bf16={use_bf16})")


if __name__ == "__main__":
    key = jax.random.PRNGKey(0)
    k1, k2, k3 = jax.random.split(key, 3)

    # f32 verification path, lane/sublane-friendly N = 16.
    _run_case(2, 8, 4, 4, 2, k1, use_bf16=False, tol=1e-4)
    # f32 verification path, ragged N = 49 -> padded to 56 with masked softmax.
    _run_case(2, 8, 7, 7, 2, k2, use_bf16=False, tol=1e-4)
    # Production-style bf16 MXU operands (f32 accumulate / softmax): loose check.
    _run_case(2, 8, 4, 4, 2, k3, use_bf16=True, tol=1e-1)

    print("KERNEL_OK")
</pallas_src>

<mosaic_0001>
module attributes {stable_mosaic.version = 11 : i64} {
  func.func @_mhsa_kernel(%arg0: i32, %arg1: memref<1x8x16xf32, #tpu.memory_space<vmem>>, %arg2: memref<24x8xf32, #tpu.memory_space<vmem>>, %arg3: memref<24x1xf32, #tpu.memory_space<vmem>>, %arg4: memref<2x4x16xf32, #tpu.memory_space<vmem>>, %arg5: memref<1x8x16xf32, #tpu.memory_space<vmem>>) attributes {dimension_semantics = [#tpu.dimension_semantics<parallel>], iteration_bounds = array<i64: 2>, scalar_prefetch = 0 : i64, scratch_operands = 0 : i64, tpu.core_type = #tpu.core_type<tc>, window_params = [{transform_indices = @transform_0, window_bounds = array<i64: 1, 8, 16>}, {pipeline_mode = #tpu.pipeline_mode<synchronous>, transform_indices = @transform_1, window_bounds = array<i64: 24, 8>}, {pipeline_mode = #tpu.pipeline_mode<synchronous>, transform_indices = @transform_2, window_bounds = array<i64: 24, 1>}, {pipeline_mode = #tpu.pipeline_mode<synchronous>, transform_indices = @transform_3, window_bounds = array<i64: 2, 4, 16>}, {transform_indices = @transform_4, window_bounds = array<i64: 1, 8, 16>}]} {
    %c0 = arith.constant 0 : index
    %c0_0 = arith.constant 0 : index
    %0 = vector.load %arg2[%c0, %c0_0] : memref<24x8xf32, #tpu.memory_space<vmem>>, vector<24x8xf32>
    %c0_1 = arith.constant 0 : index
    %c0_2 = arith.constant 0 : index
    %1 = vector.load %arg3[%c0_1, %c0_2] : memref<24x1xf32, #tpu.memory_space<vmem>>, vector<24x1xf32>
    %c0_3 = arith.constant 0 : index
    %c0_4 = arith.constant 0 : index
    %c0_5 = arith.constant 0 : index
    %2 = vector.load %arg4[%c0_3, %c0_4, %c0_5] : memref<2x4x16xf32, #tpu.memory_space<vmem>>, vector<2x4x16xf32>
    %c0_6 = arith.constant 0 : index
    %c0_7 = arith.constant 0 : index
    %c0_8 = arith.constant 0 : index
    %3 = vector.load %arg1[%c0_6, %c0_7, %c0_8] : memref<1x8x16xf32, #tpu.memory_space<vmem>>, vector<1x8x16xf32>
    %4 = vector.shape_cast %3 : vector<1x8x16xf32> to vector<8x16xf32>
    %cst = arith.constant dense<0.000000e+00> : vector<24x16xf32>
    %5 = tpu.matmul %0, %4, %cst {dimension_numbers = #tpu.dot_dimension_numbers<[1], [0], [0], [1], [0, 0, 1, 1], [], []>} : vector<24x8xf32>, vector<8x16xf32>, vector<24x16xf32> -> vector<24x16xf32>
    %6 = vector.broadcast %1 : vector<24x1xf32> to vector<24x16xf32>
    %7 = arith.addf %5, %6 : vector<24x16xf32>
    %8 = vector.extract_strided_slice %7 {offsets = [0, 0], sizes = [4, 16], strides = [1, 1]} : vector<24x16xf32> to vector<4x16xf32>
    %9 = vector.extract_strided_slice %7 {offsets = [8, 0], sizes = [4, 16], strides = [1, 1]} : vector<24x16xf32> to vector<4x16xf32>
    %10 = vector.extract_strided_slice %7 {offsets = [16, 0], sizes = [4, 16], strides = [1, 1]} : vector<24x16xf32> to vector<4x16xf32>
    %11 = vector.extract_strided_slice %2 {offsets = [0, 0, 0], sizes = [1, 4, 16], strides = [1, 1, 1]} : vector<2x4x16xf32> to vector<1x4x16xf32>
    %12 = vector.shape_cast %11 : vector<1x4x16xf32> to vector<4x16xf32>
    %13 = tpu.concatenate %8, %12 in 0 : vector<4x16xf32>, vector<4x16xf32> -> vector<8x16xf32>
    %14 = tpu.concatenate %9, %8 in 0 : vector<4x16xf32>, vector<4x16xf32> -> vector<8x16xf32>
    %15 = tpu.transpose %13, [1, 0] : vector<8x16xf32> -> vector<16x8xf32>
    %cst_9 = arith.constant dense<0.000000e+00> : vector<16x16xf32>
    %16 = tpu.matmul %15, %14, %cst_9 {dimension_numbers = #tpu.dot_dimension_numbers<[1], [0], [0], [1], [0, 0, 1, 1], [], []>} : vector<16x8xf32>, vector<8x16xf32>, vector<16x16xf32> -> vector<16x16xf32>
    %cst_10 = arith.constant dense<0xFF800000> : vector<16xf32>
    %17 = vector.multi_reduction <maximumf>, %16, %cst_10 [1] : vector<16x16xf32> to vector<16xf32>
    %18 = vector.shape_cast %17 : vector<16xf32> to vector<16x1xf32>
    %19 = vector.broadcast %18 : vector<16x1xf32> to vector<16x16xf32>
    %20 = arith.subf %16, %19 : vector<16x16xf32>
    %21 = math.exp %20 : vector<16x16xf32>
    %cst_11 = arith.constant dense<0.000000e+00> : vector<16xf32>
    %22 = vector.multi_reduction <add>, %21, %cst_11 [1] : vector<16x16xf32> to vector<16xf32>
    %23 = vector.shape_cast %22 : vector<16xf32> to vector<16x1xf32>
    %24 = tpu.reciprocal %23 : vector<16x1xf32> -> vector<16x1xf32>
    %25 = vector.broadcast %24 : vector<16x1xf32> to vector<16x16xf32>
    %26 = arith.mulf %21, %25 : vector<16x16xf32>
    %cst_12 = arith.constant dense<0.000000e+00> : vector<4x16xf32>
    %27 = tpu.matmul %10, %26, %cst_12 {dimension_numbers = #tpu.dot_dimension_numbers<[1], [1], [0], [0], [0, 0, 1, 0], [], []>} : vector<4x16xf32>, vector<16x16xf32>, vector<4x16xf32> -> vector<4x16xf32>
    %28 = vector.extract_strided_slice %7 {offsets = [4, 0], sizes = [4, 16], strides = [1, 1]} : vector<24x16xf32> to vector<4x16xf32>
    %29 = vector.extract_strided_slice %7 {offsets = [12, 0], sizes = [4, 16], strides = [1, 1]} : vector<24x16xf32> to vector<4x16xf32>
    %30 = vector.extract_strided_slice %7 {offsets = [20, 0], sizes = [4, 16], strides = [1, 1]} : vector<24x16xf32> to vector<4x16xf32>
    %31 = vector.extract_strided_slice %2 {offsets = [1, 0, 0], sizes = [1, 4, 16], strides = [1, 1, 1]} : vector<2x4x16xf32> to vector<1x4x16xf32>
    %32 = vector.shape_cast %31 : vector<1x4x16xf32> to vector<4x16xf32>
    %33 = tpu.concatenate %28, %32 in 0 : vector<4x16xf32>, vector<4x16xf32> -> vector<8x16xf32>
    %34 = tpu.concatenate %29, %28 in 0 : vector<4x16xf32>, vector<4x16xf32> -> vector<8x16xf32>
    %35 = tpu.transpose %33, [1, 0] : vector<8x16xf32> -> vector<16x8xf32>
    %cst_13 = arith.constant dense<0.000000e+00> : vector<16x16xf32>
    %36 = tpu.matmul %35, %34, %cst_13 {dimension_numbers = #tpu.dot_dimension_numbers<[1], [0], [0], [1], [0, 0, 1, 1], [], []>} : vector<16x8xf32>, vector<8x16xf32>, vector<16x16xf32> -> vector<16x16xf32>
    %cst_14 = arith.constant dense<0xFF800000> : vector<16xf32>
    %37 = vector.multi_reduction <maximumf>, %36, %cst_14 [1] : vector<16x16xf32> to vector<16xf32>
    %38 = vector.shape_cast %37 : vector<16xf32> to vector<16x1xf32>
    %39 = vector.broadcast %38 : vector<16x1xf32> to vector<16x16xf32>
    %40 = arith.subf %36, %39 : vector<16x16xf32>
    %41 = math.exp %40 : vector<16x16xf32>
    %cst_15 = arith.constant dense<0.000000e+00> : vector<16xf32>
    %42 = vector.multi_reduction <add>, %41, %cst_15 [1] : vector<16x16xf32> to vector<16xf32>
    %43 = vector.shape_cast %42 : vector<16xf32> to vector<16x1xf32>
    %44 = tpu.reciprocal %43 : vector<16x1xf32> -> vector<16x1xf32>
    %45 = vector.broadcast %44 : vector<16x1xf32> to vector<16x16xf32>
    %46 = arith.mulf %41, %45 : vector<16x16xf32>
    %cst_16 = arith.constant dense<0.000000e+00> : vector<4x16xf32>
    %47 = tpu.matmul %30, %46, %cst_16 {dimension_numbers = #tpu.dot_dimension_numbers<[1], [1], [0], [0], [0, 0, 1, 0], [], []>} : vector<4x16xf32>, vector<16x16xf32>, vector<4x16xf32> -> vector<4x16xf32>
    %48 = tpu.concatenate %27, %47 in 0 : vector<4x16xf32>, vector<4x16xf32> -> vector<8x16xf32>
    %c0_17 = arith.constant 0 : index
    %c0_18 = arith.constant 0 : index
    %c0_19 = arith.constant 0 : index
    %49 = vector.load %arg5[%c0_17, %c0_18, %c0_19] : memref<1x8x16xf32, #tpu.memory_space<vmem>>, vector<1x8x16xf32>
    %50 = vector.shape_cast %49 : vector<1x8x16xf32> to vector<8x16xf32>
    %51 = vector.shape_cast %48 : vector<8x16xf32> to vector<1x8x16xf32>
    tpu.vector_store %arg5[%c0_17, %c0_18, %c0_19], %51 {strides = array<i32>} : memref<1x8x16xf32, #tpu.memory_space<vmem>>, vector<1x8x16xf32>,
    return
  }
  func.func @transform_0(%arg0: i32) -> (i32, i32, i32) {
    %c0_i32 = arith.constant 0 : i32
    %c0_i32_0 = arith.constant 0 : i32
    %c0_i32_1 = arith.constant 0 : i32
    return %arg0, %c0_i32, %c0_i32_0 : i32, i32, i32
  }
  func.func @transform_1(%arg0: i32) -> (i32, i32) {
    %c0_i32 = arith.constant 0 : i32
    %c0_i32_0 = arith.constant 0 : i32
    %c0_i32_1 = arith.constant 0 : i32
    return %c0_i32, %c0_i32_0 : i32, i32
  }
  func.func @transform_2(%arg0: i32) -> (i32, i32) {
    %c0_i32 = arith.constant 0 : i32
    %c0_i32_0 = arith.constant 0 : i32
    %c0_i32_1 = arith.constant 0 : i32
    return %c0_i32, %c0_i32_0 : i32, i32
  }
  func.func @transform_3(%arg0: i32) -> (i32, i32, i32) {
    %c0_i32 = arith.constant 0 : i32
    %c0_i32_0 = arith.constant 0 : i32
    %c0_i32_1 = arith.constant 0 : i32
    %c0_i32_2 = arith.constant 0 : i32
    return %c0_i32, %c0_i32_0, %c0_i32_1 : i32, i32, i32
  }
  func.func @transform_4(%arg0: i32) -> (i32, i32, i32) {
    %c0_i32 = arith.constant 0 : i32
    %c0_i32_0 = arith.constant 0 : i32
    %c0_i32_1 = arith.constant 0 : i32
    return %arg0, %c0_i32, %c0_i32_0 : i32, i32, i32
  }
}

</mosaic_0001>

<bundles_post_ra>
// kernel: mhsa_pallas.1
= control target key start
LH: loop header
LB: loop body
LE: loop exit
PB: predicated region body
PF: predicated region fallthrough
CT: control target
= control target key end

     0   :  { %s949_s15 = smov 0   ;;  %s1039_s0 = inlined_call_operand.vmem [shape: f32[2,8,16], index: 0, kind: input, shape index: {}]   ;;  %s1040_s1 = inlined_call_operand.vmem [shape: f32[24,8], index: 1, kind: input, shape index: {}]   ;;  %s1041_s2 = inlined_call_operand.vmem [shape: f32[24,1], index: 2, kind: input, shape index: {}]   ;;  %s1042_s3 = inlined_call_operand.vmem [shape: f32[2,4,16], index: 3, kind: input, shape index: {}]   ;;  %s1043_s4 = inlined_call_operand.vmem [shape: f32[2,8,16], index: 4, kind: output, shape index: {}]  }
   0x1 LB: > { %s811_s16 = sadd.s32 4294967295, %s919_s15   ;;  %p815_p0 = scmp.ge.s32.totalorder %s919_s15, 1  ;;  %s919_s15 = sphi %s949_s15, %s14_s15  }
   0x2   : > { %p161_p1 = scmp.lt.s32.totalorder %s919_s15, 3 }
   0x4   : > { %p162_p2 = pnand %p815_p0, %p161_p1 }
   0x5   : > { %p185_p3 = scmp.lt.s32.totalorder (!%p162_p2), %s811_s16, 1 }
   0x6   : > { %165 = sbr.rel (%p162_p2) target bundleno = 1058 (0x422), region = 36 }
   0xb   : > { %v921_v0 = vmov 0.0   ;;  %vm922_vm0 = vmmov 0   ;;  %v196_v1 = vld [vmem:[%s1041_s2] sm:$0xff]  ;;  %s1045_s16 = smov (!%p185_p3, %s811_s16), 1  ;;  %v923_v2 = vmov 0   ;;  %v197_v3 = vld [vmem:[%s1041_s2 + $0x8] sm:$0xff] }
   0xc   : > { %849 = vmatprep.subr.mxu0 %v921_v0  ;;  %851 = vmatprep.mubr.msk.f32.mxu0 %vm922_vm0, %v921_v0  ;;  %s816_s19 = sshll.u32 %s1045_s16, 3  ;;  %v193_v4 = vld [vmem:[%s1040_s1] sm:$0xff]  ;;  %vm217_vm1 = vcmask 64512   ;;  %v194_v6 = vld [vmem:[%s1040_s1 + $0x8] sm:$0xff]  ;;  %vm310_vm2 = vcmask 1043456   ;;  %v195_v20 = vld [vmem:[%s1040_s1 + $0x10] sm:$0xff] }
   0xd   : > { %895 = vset.pattern.permute.xlu0 %v923_v2  ;;  %s188_s24 = scalar_lea.vmem %s1039_s0, %s816_s19  ;;  %v199_v7 = vld [vmem:[%s1042_s3] sm:$0xf]  ;;  %v200_v12 = vld [vmem:[%s1042_s3 + $0x4] sm:$0xf]  ;;  %vm429_vm3 = vcmask 130048   ;;  %v198_v60 = vld [vmem:[%s1041_s2 + $0x10] sm:$0xff]  ;;  %s192_s13 = scalar_lea.vmem %s1043_s4, %s816_s19 }
   0xe   : > { %204 = vperm.xlu0 %895, %v196_v1   ;;  %v201_v5 = vld [vmem:[%s188_s24] sm:$0xff]  ;;  %v308_v9 = vrot.slane %v199_v7, 4  ;;  %v532_v18 = vrot.slane %v200_v12, 4 }
   0xf   : > { %850 = vmatpush3.msra.mxu0 %v201_v5 }
  0x10   : > { %852 = vmatmul.mubr.msk.f32.vlgmr.msra.gmra.mxu0 %vm217_vm1, %v193_v4 }
  0x11   : > { %854 = vmatprep.mubr.msk.f32.mxu0 %vm922_vm0, %v921_v0 }
  0x12   : > { %209 = vperm.xlu0 %895, %v197_v3  }
  0x14   : > { %855 = vmatmul.mubr.msk.f32.gmra.mxu0 %vm217_vm1, %v194_v6 }
  0x15   : > { %857 = vmatprep.mubr.msk.f32.mxu0 %vm922_vm0, %v921_v0 }
  0x18   : > { %858 = vmatmul.mubr.msk.f32.gmra.mxu0 %vm217_vm1, %v195_v20 }
  0x89   : > { %v205_v8 = vpop.permute.xlu0 %204 }
  0x8d   : > { %v210_v15 = vpop.permute.xlu0 %209 }
  0xd0   : > { %v293_v10 = vpop.f32.mrf.mxu0 }
  0xd1   : > { %v294_v11 = vadd.f32 %v293_v10, %v205_v8 }
  0xd2   : > { %v853_v13 = vpop.f32.mrf.mxu0 }
  0xd3   : > { %v311_v14 = vsel %vm310_vm2, %v294_v11, %v308_v9  ;;  %v313_v17 = vrot.slane %v294_v11, 4 }
  0xd4   : > { %316 = vxpose.xlu1.b32.start.end [1/1] (short) (narrow) %v311_v14, 16  ;;  %v298_v16 = vpop.f32.mrf.mxu0 }
  0xd5   : > { %v299_v19 = vadd.f32 %v298_v16, %v210_v15  ;;  %v534_v24 = vsel %vm310_vm2, %v313_v17, %v532_v18 }
  0xd6   : > { %v856_v21 = vpop.f32.mrf.mxu0 }
  0xd7   : > { %v536_v22 = vrot.slane %v299_v19, 4  ;;  %v315_v23 = vsel %vm310_vm2, %v299_v19, %v313_v17 }
  0xd8   : > { %860 = vmatprep.subr.mxu1 %v315_v23  ;;  %v303_v30 = vpop.f32.mrf.mxu0 }
  0xd9   : > { %539 = vxpose.xlu1.b32.start.end [1/1] (short) (narrow) %v534_v24, 16  ;;  %861 = vmatpush3.msra.mxu1 %v315_v23  ;;  %v538_v25 = vsel %vm310_vm2, %v536_v22, %v294_v11 }
  0xda   : > { %872 = vmatprep.subr.mxu0 %v538_v25  ;;  %865 = vmatprep.subr.mxu1 %v921_v0  ;;  %v859_v31 = vpop.f32.mrf.mxu0 }
  0xdb   : > { %873 = vmatpush3.msra.mxu0 %v538_v25 }
  0xf7   : > { %896 = vset.pattern.permute.xlu1 %v923_v2 }
 0x150   : > { %v332_v26 = vpop.trf.xlu1 }
 0x151   : > { %862 = vmatprep.mubr.msk.f32.mxu1 %vm217_vm1, %v332_v26 }
 0x154   : > { %v333_v27 = vpop.trf.xlu1 }
 0x155   : > { %863 = vmatmul.mubr.msk.f32.vlgmr.msra.gmra.mxu1 %vm217_vm1, %v333_v27 }
 0x156   : > { %869 = vmatprep.mubr.msk.f32.mxu1 %vm922_vm0, %v921_v0 }
 0x158   : > { %v555_v28 = vpop.trf.xlu1 }
 0x159   : > { %874 = vmatprep.mubr.msk.f32.mxu0 %vm217_vm1, %v555_v28 }
 0x15c   : > { %v556_v29 = vpop.trf.xlu1 }
 0x15d   : > { %875 = vmatmul.mubr.msk.f32.vlgmr.msra.gmra.mxu0 %vm217_vm1, %v556_v29 }
 0x215   : > { %v864_v32 = vpop.f32.mrf.mxu1 }
 0x216   : > { %v433_v33 = vsel %vm429_vm3, %v864_v32, -inf }
 0x217   : > { %434 = vmax.xlane.f32.xlu0 %v433_v33  ;;  %v420_v34 = vpop.f32.mrf.mxu1 }
 0x218   : > { %v430_v35 = vsel %vm429_vm3, %v420_v34, -inf }
 0x219   : > { %431 = vmax.xlane.f32.xlu1 %v430_v35 }
 0x21d   : > { %v876_v36 = vpop.f32.mrf.mxu0 }
 0x21e   : > { %v655_v37 = vsel %vm429_vm3, %v876_v36, -inf }
 0x21f   : > { %656 = vmax.xlane.f32.xlu0 %v655_v37  ;;  %v643_v38 = vpop.f32.mrf.mxu0 }
 0x220   : > { %v652_v39 = vsel %vm429_vm3, %v643_v38, -inf }
 0x223   : > { %653 = vmax.xlane.f32.xlu0 %v652_v39 }
 0x2a0   : > { %v435_v40 = vpop.xlane.xlu0 %434 }
 0x2a1   : > { %v437_v41 = vsub.f32 %v864_v32, %v435_v40 }
 0x2a2   : > { %v432_v42 = vpop.xlane.xlu1 %431 }
 0x2a3   : > { %v440_v43 = vmul.f32 1.442695, %v437_v41  ;;  %v436_v44 = vsub.f32 %v420_v34, %v432_v42 }
 0x2a5   : > { %897 = vpow2.f32 %v440_v43  ;;  %v438_v45 = vmul.f32 1.442695, %v436_v44 }
 0x2a7   : > { %899 = vpow2.f32 %v438_v45 }
 0x2a8   : > { %v657_v46 = vpop.xlane.xlu0 %656 }
 0x2a9   : > { %v659_v47 = vsub.f32 %v876_v36, %v657_v46 }
 0x2ab   : > { %v662_v48 = vmul.f32 1.442695, %v659_v47 }
 0x2ac   : > { %v654_v49 = vpop.xlane.xlu0 %653 }
 0x2ad   : > { %901 = vpow2.f32 %v662_v48  ;;  %v658_v50 = vsub.f32 %v643_v38, %v654_v49 }
 0x2af   : > { %v660_v51 = vmul.f32 1.442695, %v658_v50 }
 0x2b1   : > { %903 = vpow2.f32 %v660_v51 }
 0x2b2   : > { %v898_v52 = vpop.eup %897 }
 0x2b3   : > { %v445_v53 = vsel %vm429_vm3, %v898_v52, 0.0 }
 0x2b4   : > { %v900_v54 = vpop.eup %899  ;;  %446 = vadd.xlane.f32.xlu0 %v445_v53 }
 0x2b5   : > { %v442_v55 = vsel %vm429_vm3, %v900_v54, 0.0 }
 0x2b8   : > { %443 = vadd.xlane.f32.xlu0 %v442_v55 }
 0x2ba   : > { %v902_v56 = vpop.eup %901 }
 0x2bb   : > { %v667_v57 = vsel %vm429_vm3, %v902_v56, 0.0 }
 0x2bc   : > { %668 = vadd.xlane.f32.xlu1 %v667_v57 }
 0x2be   : > { %v904_v58 = vpop.eup %903 }
 0x2bf   : > { %v664_v59 = vsel %vm429_vm3, %v904_v58, 0.0 }
 0x2c0   : > { %665 = vadd.xlane.f32.xlu0 %v664_v59 }
 0x2cd   : > { %214 = vperm.xlu1 %896, %v198_v60  }
 0x33d   : > { %v447_v61 = vpop.xlane.xlu0 %446 }
 0x33e   : > { %905 = vrcp.f32 %v447_v61 }
 0x341   : > { %v444_v62 = vpop.xlane.xlu0 %443 }
 0x342   : > { %907 = vrcp.f32 %v444_v62 }
 0x345   : > { %v669_v63 = vpop.xlane.xlu1 %668 }
 0x346   : > { %909 = vrcp.f32 %v669_v63 }
 0x349   : > { %v666_v1 = vpop.xlane.xlu0 %665  ;;  %v215_v5 = vpop.permute.xlu1 %214 }
 0x34a   : > { %911 = vrcp.f32 %v666_v1  ;;  %v304_v8 = vadd.f32 %v303_v30, %v215_v5 }
 0x34b   : > { %v906_v2 = vpop.eup %905 }
 0x34c   : > { %v451_v3 = vmul.f32 %v906_v2, %v898_v52  ;;  %v674_v12 = vrot.slane %v304_v8, 4 }
 0x34e   : > { %866 = vmatpush3.xpose.msk.msra.mxu1 %vm429_vm3, %v451_v3 }
 0x34f   : > { %v908_v4 = vpop.eup %907  ;;  %867 = vmatprep.subr.mxu1 %v921_v0 }
 0x350   : > { %v450_v6 = vmul.f32 %v908_v4, %v900_v54 }
 0x352   : > { %868 = vmatpush3.xpose.msk.msra.mxu1 %vm429_vm3, %v450_v6 }
 0x353   : > { %v910_v7 = vpop.eup %909  ;;  %877 = vmatprep.subr.mxu1 %v921_v0 }
 0x354   : > { %v673_v9 = vmul.f32 %v910_v7, %v902_v56 }
 0x355   : > { %870 = vmatmul.mubr.msk.f32.vlgmr.msra.gmra.mxu1 %vm429_vm3, %v304_v8 }
 0x356   : > { %878 = vmatpush3.xpose.msk.msra.mxu1 %vm429_vm3, %v673_v9  ;;  %881 = vmatprep.mubr.msk.f32.mxu1 %vm922_vm0, %v921_v0 }
 0x357   : > { %v912_v10 = vpop.eup %911  ;;  %879 = vmatprep.subr.mxu1 %v921_v0 }
 0x358   : > { %v672_v11 = vmul.f32 %v912_v10, %v904_v58 }
 0x35a   : > { %880 = vmatpush3.xpose.msk.msra.mxu1 %vm429_vm3, %v672_v11 }
 0x35d   : > { %882 = vmatmul.mubr.msk.f32.vlgmr.msra.gmra.mxu1 %vm429_vm3, %v674_v12 }
 0x415   : > { %v527_v13 = vpop.f32.mrf.mxu1 }
 0x417   : > { %v871_v14 = vpop.f32.mrf.mxu1 }
 0x41d   : > { %v749_v15 = vpop.f32.mrf.mxu1 }
 0x41e   : > { %v754_v16 = vrot.slane %v749_v15, 4 }
 0x41f   : > { %v883_v17 = vpop.f32.mrf.mxu1 }
 0x420   : > { %v756_v18 = vsel %vm310_vm2, %v527_v13, %v754_v16 }
 0x421   : > { %757 = vst.msk [vmem:[%s192_s13] sm:$0xff] %vm429_vm3, %v756_v18 }
 0x422 PF: > { %s14_s15 = sadd.s32 1, %s919_s15  }
 0x423   : > { %p11_p4 = scmp.ge.s32.totalorder %s14_s15, 4  }
 0x425   :  { %13 = sbr.rel (!%p11_p4) target bundleno = 1 (0x1), region = 66 }

</bundles_post_ra>
